<compile_context>
chip_gen: v5e
topology: v5e:2x2
jax: 0.10.0
libtpu: 0.0.40
codegen_flags: <defaults>
</compile_context>

<pallas_src>
import functools
import math

import numpy as np
import jax
import jax.numpy as jnp
from jax.experimental import pallas as pl
from jax.experimental.pallas import tpu as pltpu

LANE = 128


# ----------------------------------------------------------------------------
# Filter construction (deterministic buffer init, numpy glue).
# Mirrors kaiser_sinc_filter1d from the PyTorch module.
# ----------------------------------------------------------------------------
def kaiser_sinc_filter1d(cutoff: float, half_width: float, kernel_size: int) -> np.ndarray:
    even = kernel_size % 2 == 0
    half_size = kernel_size // 2
    delta_f = 4 * half_width
    A = 2.285 * (half_size - 1) * math.pi * delta_f + 7.95
    if A > 50.0:
        beta = 0.1102 * (A - 8.7)
    elif A >= 21.0:
        beta = 0.5842 * (A - 21) ** 0.4 + 0.07886 * (A - 21.0)
    else:
        beta = 0.0
    # np.kaiser(M, beta) == torch.kaiser_window(M, periodic=False, beta=beta)
    window = np.kaiser(kernel_size, beta).astype(np.float64)
    if even:
        time = np.arange(-half_size, half_size, dtype=np.float64) + 0.5
    else:
        time = np.arange(kernel_size, dtype=np.float64) - half_size
    if cutoff == 0:
        filt = np.zeros_like(time)
    else:
        filt = 2 * cutoff * window * np.sinc(2 * cutoff * time)  # np.sinc == torch.sinc
        filt = filt / filt.sum()
    return filt.astype(np.float32)  # (kernel_size,)


def _round_up(n: int, m: int) -> int:
    return ((n + m - 1) // m) * m


def _build_fir_weights(taps: np.ndarray, pad_left: int):
    """Banded-Toeplitz weights for the chunked MXU formulation.

    For a 128-wide output chunk with input chunks prev/cur/next (each 128 wide):
        out[r, t] = sum_k w[k] * x[chunk_start + t + k - pad_left]
                  = (prev @ Wp + cur @ Wc + next @ Wn)[r, t]
    cl / cr are the replicate-padding coefficient rows used at the global
    left / right edges (they replace the Wp / Wn terms there).
    """
    K = int(taps.shape[0])
    wp = np.zeros((LANE, LANE), np.float32)
    wc = np.zeros((LANE, LANE), np.float32)
    wn = np.zeros((LANE, LANE), np.float32)
    cl = np.zeros((LANE,), np.float32)
    cr = np.zeros((LANE,), np.float32)
    for t in range(LANE):
        for k in range(K):
            p = t + k - pad_left  # input position relative to the chunk start
            if p < 0:
                wp[p + LANE, t] += taps[k]
                cl[t] += taps[k]
            elif p < LANE:
                wc[p, t] += taps[k]
            else:
                wn[p - LANE, t] += taps[k]
                cr[t] += taps[k]
    return np.stack([wp, wc, wn]), np.stack([cl, cr])  # (3,128,128), (2,128)


# ----------------------------------------------------------------------------
# Pallas kernel: depthwise FIR as chunked banded-Toeplitz matmuls on the MXU.
#   inputs:  w_ref  (3,128,128)  Wp/Wc/Wn          (resident, constant index map)
#            c_ref  (2,128)      cl/cr edge coeffs (resident)
#            xp_ref (rb,128)     128-chunk just before this time block (halo)
#            x_ref  (rb,TB)      current (rows, time) block, TB = cb*128
#            xn_ref (rb,128)     128-chunk just after this time block (halo)
#   output:  o_ref  (rb,TB)
# ----------------------------------------------------------------------------
def _lpf_fir_kernel(w_ref, c_ref, xp_ref, x_ref, xn_ref, o_ref, *,
                    cb: int, n_tblocks: int, precision):
    j = pl.program_id(1)
    is_first = j == 0
    is_last = j == n_tblocks - 1

    wp = w_ref[0]
    wc = w_ref[1]
    wn = w_ref[2]
    cl = c_ref[0:1, :]  # (1, 128) f32
    cr = c_ref[1:2, :]  # (1, 128) f32

    def mm(a, w):
        return jnp.dot(a, w, preferred_element_type=jnp.float32, precision=precision)

    for c in range(cb):  # static, fully unrolled
        lo = c * LANE
        cur = x_ref[:, lo:lo + LANE]
        mid = mm(cur, wc)

        # Contribution of the pad_left samples to the left of this chunk.
        if c > 0:
            left = mm(x_ref[:, lo - LANE:lo], wp)              # aligned slice of own block
        else:
            left = jnp.where(
                is_first,
                x_ref[:, 0:1].astype(jnp.float32) * cl,        # fused replicate-pad (left edge)
                mm(xp_ref[...], wp),                           # halo chunk from previous block
            )

        # Contribution of the pad_right samples to the right of this chunk.
        if c < cb - 1:
            right = mm(x_ref[:, lo + LANE:lo + 2 * LANE], wn)  # aligned slice of own block
        else:
            right = jnp.where(
                is_last,
                x_ref[:, cb * LANE - 1:cb * LANE].astype(jnp.float32) * cr,  # right edge
                mm(xn_ref[...], wn),                           # halo chunk from next block
            )

        # Independent partial sums; single lane-dense 128-wide aligned store.
        o_ref[:, lo:lo + LANE] = (mid + (left + right)).astype(o_ref.dtype)


class LowPassFilter1d:
    def __init__(self, cutoff=0.5, half_width=0.6, stride: int = 1, kernel_size: int = 12):
        if cutoff < -0.0:
            raise ValueError("Minimum cutoff must be larger than zero.")
        if cutoff > 0.5:
            raise ValueError("A cutoff above 0.5 does not make sense.")
        if kernel_size > LANE:
            raise NotImplementedError("kernel_size must be <= 128 for this kernel.")
        even = kernel_size % 2 == 0
        self.pad_left = kernel_size // 2 - int(even)
        self.pad_right = kernel_size // 2
        self.kernel_size = kernel_size
        self.stride = stride
        if stride != 1:
            # TODO(synk): strided depthwise FIR not implemented (module default is stride=1).
            raise NotImplementedError("Only stride=1 is implemented in the Pallas kernel.")
        filt = kaiser_sinc_filter1d(cutoff, half_width, kernel_size)
        self.filter = jnp.asarray(filt)  # exposed for reference checks
        w3, c2 = _build_fir_weights(filt, self.pad_left)
        self._w3 = jnp.asarray(w3)  # (3, 128, 128) f32
        self._c2 = jnp.asarray(c2)  # (2, 128) f32

    def __call__(self, x: jax.Array, *, block_rows=None, block_chunks=None) -> jax.Array:
        B, C, T = x.shape
        R = B * C
        x2 = x.reshape(R, T)

        # Time axis must be a multiple of 128 lanes for aligned chunking.
        TK = _round_up(T, LANE)
        if TK != T:
            # TODO(synk): fuse the alignment pad for non-multiple-of-128 T (avoids one HBM copy).
            x2 = jnp.pad(x2, ((0, 0), (0, TK - T)), mode="edge")
        nc = TK // LANE

        itemsize = jnp.dtype(x.dtype).itemsize
        row_align = 8 if itemsize >= 4 else 16
        r_full = _round_up(R, row_align)

        # ---- tile selection: ~2 MiB of input per block (mem-bound sweet spot) ----
        target = 2 * 1024 * 1024
        if block_chunks is None:
            want_cb = max(16, -(-target // (itemsize * LANE * r_full)))  # ceil div
            want_cb = int(min(want_cb, nc, 256))
            cb = 1
            for d in range(1, want_cb + 1):  # largest divisor of nc <= want_cb
                if nc % d == 0:
                    cb = d
        else:
            cb = int(block_chunks)
            assert nc % cb == 0, "block_chunks must divide T/128"
        TB = cb * LANE

        if block_rows is None:
            rb = min(r_full, max(row_align, _round_up(target // (itemsize * TB), row_align)))
        else:
            rb = _round_up(int(block_rows), row_align)
        grid = (pl.cdiv(R, rb), nc // cb)

        # ---- dtype / precision routing ----
        if x.dtype == jnp.bfloat16:
            w3 = self._w3.astype(jnp.bfloat16)      # native bf16 MXU operands, f32 accumulation
            precision = None
        else:
            w3 = self._w3                            # f32 operands
            precision = jax.lax.Precision.HIGHEST    # multi-pass, ~f32-accurate MXU matmul

        # ---- VMEM limit: derived per generation, with a safe fallback ----
        try:
            info = pltpu.get_tpu_info()
            vmem_cap = int(getattr(info, "vmem_capacity_bytes", 64 * 1024 * 1024))
        except Exception:
            vmem_cap = 64 * 1024 * 1024
        vmem_limit = max(32 * 1024 * 1024, min(vmem_cap - 16 * 1024 * 1024, 96 * 1024 * 1024))

        cost = pl.CostEstimate(
            flops=int(2 * 3 * LANE * R * TK),                      # MXU MACs actually issued
            transcendentals=0,
            bytes_accessed=int((2 + 2.0 / cb) * R * TK * itemsize),
        )

        kernel = functools.partial(
            _lpf_fir_kernel, cb=cb, n_tblocks=grid[1], precision=precision)

        out2 = pl.pallas_call(
            kernel,
            out_shape=jax.ShapeDtypeStruct((R, TK), x.dtype),
            grid=grid,
            in_specs=[
                pl.BlockSpec((3, LANE, LANE), lambda i, j: (0, 0, 0)),        # Wp/Wc/Wn (resident)
                pl.BlockSpec((2, LANE), lambda i, j: (0, 0)),                 # edge coeffs
                pl.BlockSpec((rb, LANE),                                      # prev halo chunk
                             lambda i, j: (i, jnp.maximum(j * cb - 1, 0))),
                pl.BlockSpec((rb, TB), lambda i, j: (i, j)),                  # main block
                pl.BlockSpec((rb, LANE),                                      # next halo chunk
                             lambda i, j: (i, jnp.minimum((j + 1) * cb, nc - 1))),
            ],
            out_specs=pl.BlockSpec((rb, TB), lambda i, j: (i, j)),
            compiler_params=pltpu.CompilerParams(
                # TODO(synk): use CORE_PARALLEL / core_map on v7x to engage both TensorCores.
                dimension_semantics=("parallel", "parallel"),
                vmem_limit_bytes=int(vmem_limit),
            ),
            cost_estimate=cost,
        )(w3, self._c2, x2, x2, x2)

        if TK != T:
            out2 = out2[:, :T]
        return out2.reshape(B, C, T)


# ----------------------------------------------------------------------------
# Pure-JAX reference: replicate pad + depthwise FIR (cross-correlation).
# ----------------------------------------------------------------------------
def _reference(x: jax.Array, lpf: LowPassFilter1d) -> jax.Array:
    T = x.shape[-1]
    x_pad = jnp.pad(x, ((0, 0), (0, 0), (lpf.pad_left, lpf.pad_right)), mode="edge")
    w = lpf.filter
    return sum(w[k] * x_pad[:, :, k:k + T] for k in range(lpf.kernel_size))


if __name__ == "__main__":
    lpf = LowPassFilter1d(cutoff=0.5, half_width=0.6, stride=1, kernel_size=12)
    TOL = dict(atol=3e-5, rtol=3e-5)  # ~f32-accurate (a plain bf16 matmul would err at ~1e-2)

    # 1) Small module-like shape (B, C, T) = (2, 4, 16): exercises the alignment
    #    pad path and the single-chunk (left + right edge) kernel.
    x1 = jax.random.normal(jax.random.PRNGKey(0), (2, 4, 16), dtype=jnp.float32)
    y1 = jax.block_until_ready(lpf(x1))
    assert y1.shape == x1.shape
    assert jnp.allclose(y1, _reference(x1, lpf), **TOL)

    # 2) Multi time-block grid (halos on both sides) + a ragged final row block.
    x2 = jax.random.normal(jax.random.PRNGKey(1), (3, 3, 640), dtype=jnp.float32)
    y2 = jax.block_until_ready(lpf(x2, block_rows=8, block_chunks=1))
    assert jnp.allclose(y2, _reference(x2, lpf), **TOL)

    # 3) Non-multiple-of-128 T with multi-chunk time blocks.
    x3 = jax.random.normal(jax.random.PRNGKey(2), (2, 4, 1000), dtype=jnp.float32)
    y3 = jax.block_until_ready(lpf(x3, block_chunks=2))
    assert jnp.allclose(y3, _reference(x3, lpf), **TOL)

    # 4) bf16 I/O takes the native bf16 MXU path (f32 accumulation).
    x4 = x2.astype(jnp.bfloat16)
    y4 = jax.block_until_ready(lpf(x4, block_chunks=1))
    ref4 = _reference(x4.astype(jnp.float32), lpf)
    assert jnp.allclose(y4.astype(jnp.float32), ref4, atol=3e-2, rtol=3e-2)

    print("KERNEL_OK")
</pallas_src>

<mosaic_0001>
module attributes {stable_mosaic.version = 11 : i64} {
  func.func @_lpf_fir_kernel(%arg0: i32, %arg1: i32, %arg2: memref<3x128x128xf32, #tpu.memory_space<vmem>>, %arg3: memref<2x128xf32, #tpu.memory_space<vmem>>, %arg4: memref<8x128xf32, #tpu.memory_space<vmem>>, %arg5: memref<8x128xf32, #tpu.memory_space<vmem>>, %arg6: memref<8x128xf32, #tpu.memory_space<vmem>>, %arg7: memref<8x128xf32, #tpu.memory_space<vmem>>) attributes {dimension_semantics = [#tpu.dimension_semantics<parallel>, #tpu.dimension_semantics<parallel>], iteration_bounds = array<i64: 1, 1>, scalar_prefetch = 0 : i64, scratch_operands = 0 : i64, tpu.core_type = #tpu.core_type<tc>, window_params = [{pipeline_mode = #tpu.pipeline_mode<synchronous>, transform_indices = @transform_0, window_bounds = array<i64: 3, 128, 128>}, {pipeline_mode = #tpu.pipeline_mode<synchronous>, transform_indices = @transform_1, window_bounds = array<i64: 2, 128>}, {transform_indices = @transform_2, window_bounds = array<i64: 8, 128>}, {transform_indices = @transform_3, window_bounds = array<i64: 8, 128>}, {transform_indices = @transform_4, window_bounds = array<i64: 8, 128>}, {transform_indices = @transform_5, window_bounds = array<i64: 8, 128>}]} {
    %c0_i32 = arith.constant 0 : i32
    %0 = arith.cmpi eq, %arg1, %c0_i32 : i32
    %c0_i32_0 = arith.constant 0 : i32
    %1 = arith.cmpi eq, %arg1, %c0_i32_0 : i32
    %c0 = arith.constant 0 : index
    %c0_1 = arith.constant 0 : index
    %c0_2 = arith.constant 0 : index
    %2 = vector.load %arg2[%c0, %c0_1, %c0_2] : memref<3x128x128xf32, #tpu.memory_space<vmem>>, vector<1x128x128xf32>
    %3 = vector.shape_cast %2 : vector<1x128x128xf32> to vector<128x128xf32>
    %c1 = arith.constant 1 : index
    %c0_3 = arith.constant 0 : index
    %c0_4 = arith.constant 0 : index
    %4 = vector.load %arg2[%c1, %c0_3, %c0_4] : memref<3x128x128xf32, #tpu.memory_space<vmem>>, vector<1x128x128xf32>
    %5 = vector.shape_cast %4 : vector<1x128x128xf32> to vector<128x128xf32>
    %c2 = arith.constant 2 : index
    %c0_5 = arith.constant 0 : index
    %c0_6 = arith.constant 0 : index
    %6 = vector.load %arg2[%c2, %c0_5, %c0_6] : memref<3x128x128xf32, #tpu.memory_space<vmem>>, vector<1x128x128xf32>
    %7 = vector.shape_cast %6 : vector<1x128x128xf32> to vector<128x128xf32>
    %c0_7 = arith.constant 0 : index
    %c0_8 = arith.constant 0 : index
    %8 = vector.load %arg3[%c0_7, %c0_8] : memref<2x128xf32, #tpu.memory_space<vmem>>, vector<1x128xf32>
    %c1_9 = arith.constant 1 : index
    %c0_10 = arith.constant 0 : index
    %9 = vector.load %arg3[%c1_9, %c0_10] : memref<2x128xf32, #tpu.memory_space<vmem>>, vector<1x128xf32>
    %c0_11 = arith.constant 0 : index
    %c0_12 = arith.constant 0 : index
    %10 = vector.load %arg5[%c0_11, %c0_12] : memref<8x128xf32, #tpu.memory_space<vmem>>, vector<8x128xf32>
    %cst = arith.constant dense<0.000000e+00> : vector<8x128xf32>
    %11 = tpu.matmul %10, %5, %cst {dimension_numbers = #tpu.dot_dimension_numbers<[1], [0], [0], [1], [0, 0, 1, 1], [], []>, precision = #tpu.contract_precision<fp32>} : vector<8x128xf32>, vector<128x128xf32>, vector<8x128xf32> -> vector<8x128xf32>
    %c0_13 = arith.constant 0 : index
    %c0_14 = arith.constant 0 : index
    %12 = vector.load %arg5[%c0_13, %c0_14] : memref<8x128xf32, #tpu.memory_space<vmem>>, vector<8x1xf32>
    %13 = vector.broadcast %12 : vector<8x1xf32> to vector<8x128xf32>
    %14 = vector.broadcast %8 : vector<1x128xf32> to vector<8x128xf32>
    %15 = arith.mulf %13, %14 : vector<8x128xf32>
    %c0_15 = arith.constant 0 : index
    %c0_16 = arith.constant 0 : index
    %16 = vector.load %arg4[%c0_15, %c0_16] : memref<8x128xf32, #tpu.memory_space<vmem>>, vector<8x128xf32>
    %cst_17 = arith.constant dense<0.000000e+00> : vector<8x128xf32>
    %17 = tpu.matmul %16, %3, %cst_17 {dimension_numbers = #tpu.dot_dimension_numbers<[1], [0], [0], [1], [0, 0, 1, 1], [], []>, precision = #tpu.contract_precision<fp32>} : vector<8x128xf32>, vector<128x128xf32>, vector<8x128xf32> -> vector<8x128xf32>
    %18 = arith.select %0, %15, %17 : vector<8x128xf32>
    %c0_18 = arith.constant 0 : index
    %c127 = arith.constant 127 : index
    %19 = vector.load %arg5[%c0_18, %c127] : memref<8x128xf32, #tpu.memory_space<vmem>>, vector<8x1xf32>
    %20 = vector.broadcast %19 : vector<8x1xf32> to vector<8x128xf32>
    %21 = vector.broadcast %9 : vector<1x128xf32> to vector<8x128xf32>
    %22 = arith.mulf %20, %21 : vector<8x128xf32>
    %c0_19 = arith.constant 0 : index
    %c0_20 = arith.constant 0 : index
    %23 = vector.load %arg6[%c0_19, %c0_20] : memref<8x128xf32, #tpu.memory_space<vmem>>, vector<8x128xf32>
    %cst_21 = arith.constant dense<0.000000e+00> : vector<8x128xf32>
    %24 = tpu.matmul %23, %7, %cst_21 {dimension_numbers = #tpu.dot_dimension_numbers<[1], [0], [0], [1], [0, 0, 1, 1], [], []>, precision = #tpu.contract_precision<fp32>} : vector<8x128xf32>, vector<128x128xf32>, vector<8x128xf32> -> vector<8x128xf32>
    %25 = arith.select %1, %22, %24 : vector<8x128xf32>
    %26 = arith.addf %18, %25 : vector<8x128xf32>
    %27 = arith.addf %11, %26 : vector<8x128xf32>
    %c0_22 = arith.constant 0 : index
    %c0_23 = arith.constant 0 : index
    %28 = vector.load %arg7[%c0_22, %c0_23] : memref<8x128xf32, #tpu.memory_space<vmem>>, vector<8x128xf32>
    tpu.vector_store %arg7[%c0_22, %c0_23], %27 {strides = array<i32>} : memref<8x128xf32, #tpu.memory_space<vmem>>, vector<8x128xf32>,
    return
  }
  func.func @transform_0(%arg0: i32, %arg1: i32) -> (i32, i32, i32) {
    %c0_i32 = arith.constant 0 : i32
    %c0_i32_0 = arith.constant 0 : i32
    %c0_i32_1 = arith.constant 0 : i32
    %c0_i32_2 = arith.constant 0 : i32
    return %c0_i32, %c0_i32_0, %c0_i32_1 : i32, i32, i32
  }
  func.func @transform_1(%arg0: i32, %arg1: i32) -> (i32, i32) {
    %c0_i32 = arith.constant 0 : i32
    %c0_i32_0 = arith.constant 0 : i32
    %c0_i32_1 = arith.constant 0 : i32
    return %c0_i32, %c0_i32_0 : i32, i32
  }
  func.func @transform_2(%arg0: i32, %arg1: i32) -> (i32, i32) {
    %c1_i32 = arith.constant 1 : i32
    %0 = arith.muli %arg1, %c1_i32 : i32
    %c1_i32_0 = arith.constant 1 : i32
    %1 = arith.subi %0, %c1_i32_0 : i32
    %c0_i32 = arith.constant 0 : i32
    %2 = arith.maxsi %1, %c0_i32 : i32
    %c0_i32_1 = arith.constant 0 : i32
    return %arg0, %2 : i32, i32
  }
  func.func @transform_3(%arg0: i32, %arg1: i32) -> (i32, i32) {
    %c0_i32 = arith.constant 0 : i32
    return %arg0, %arg1 : i32, i32
  }
  func.func @transform_4(%arg0: i32, %arg1: i32) -> (i32, i32) {
    %c1_i32 = arith.constant 1 : i32
    %0 = arith.addi %arg1, %c1_i32 : i32
    %c1_i32_0 = arith.constant 1 : i32
    %1 = arith.muli %0, %c1_i32_0 : i32
    %c0_i32 = arith.constant 0 : i32
    %2 = arith.minsi %1, %c0_i32 : i32
    %c0_i32_1 = arith.constant 0 : i32
    return %arg0, %2 : i32, i32
  }
  func.func @transform_5(%arg0: i32, %arg1: i32) -> (i32, i32) {
    %c0_i32 = arith.constant 0 : i32
    return %arg0, %arg1 : i32, i32
  }
}

</mosaic_0001>

<bundles_post_ra>
// kernel: tpu_custom_call.1
= control target key start
LH: loop header
LB: loop body
LE: loop exit
PB: predicated region body
PF: predicated region fallthrough
CT: control target
= control target key end

     0   :  { %10 = vsyncpa [#allocation3], 0  ;;  %s2215_s0 = inlined_call_operand.hbm [shape: f32[3,128,128], index: 0, kind: input, shape index: {}]   ;;  %s2216_s1 = inlined_call_operand.hbm [shape: f32[2,128], index: 1, kind: input, shape index: {}]   ;;  %s2217_s2 = inlined_call_operand.hbm [shape: f32[8,128], index: 2, kind: input, shape index: {}]   ;;  %s2218_s3 = inlined_call_operand.hbm [shape: f32[8,128], index: 3, kind: input, shape index: {}]   ;;  %s2219_s4 = inlined_call_operand.hbm [shape: f32[8,128], index: 4, kind: input, shape index: {}]   ;;  %s2220_s5 = inlined_call_operand.hbm [shape: f32[8,128], index: 5, kind: output, shape index: {}]  }
   0x1   :  { %11 = vsyncpa [#allocation6], 0 }
   0x2   :  { %12 = vsyncpa [#allocation9], 0  ;;  %s32_s20 = sshll.u32 %s2216_s1, 4  ;;  %s33_s20 = int_to_ptr.hbm [resolvable:$true] %s32_s20 }
   0x3   :  { %13 = vsyncpa [#allocation4], 0  ;;  %s1395_s21 = smov [#allocation5]   ;;  %s59_s25 = sshll.u32 %s2218_s3, 4  ;;  %s60_s25 = int_to_ptr.hbm [resolvable:$true] %s59_s25 }
   0x4   :  { %s34_s22 = sshll.u32 %s1395_s21, 4  ;;  %s1396_s26 = smov [#allocation8]   ;;  %s35_s22 = int_to_ptr.vmem [resolvable:$true] %s34_s22 }
   0x5   :  { %37 = dma.hbm_to_vmem [thread:$0]  %s33_s20, 32, %s35_s22, [#allocation6]  }
   0x6   :  { %s61_s27 = sshll.u32 %s1396_s26, 4  ;;  %s18_s30 = sshll.u32 %s2215_s0, 4  ;;  %s62_s27 = int_to_ptr.vmem [resolvable:$true] %s61_s27  ;;  %s19_s30 = int_to_ptr.hbm [resolvable:$true] %s18_s30 }
   0x7   :  { %64 = dma.hbm_to_vmem [thread:$0]  %s60_s25, 128, %s62_s27, [#allocation9]  }
   0x8   :  { %s1397_s1 = smov [#allocation2]   ;;  %s48_s9 = sshll.u32 %s2217_s2, 4  ;;  %s49_s9 = int_to_ptr.hbm [resolvable:$true] %s48_s9 }
   0x9   :  { %s20_s6 = sshll.u32 %s1397_s1, 4  ;;  %s1398_s10 = smov 128   ;;  %s21_s6 = int_to_ptr.vmem [resolvable:$true] %s20_s6 }
   0xa   :  { %s1399_s3 = smov 8   ;;  %s1400_s11 = smov [#allocation7]  }
   0xb   :  { %26 = dma.hbm_to_vmem [thread:$0]  %s19_s30, 6144, %s21_s6, [#allocation3], %s1398_s10, %s1398_s10, %s1399_s3  }
   0xc   :  { %s50_s12 = sshll.u32 %s1400_s11, 4  ;;  %s75_s0 = sshll.u32 %s2219_s4, 4  ;;  %s51_s12 = int_to_ptr.vmem [resolvable:$true] %s50_s12  ;;  %s76_s0 = int_to_ptr.hbm [resolvable:$true] %s75_s0 }
   0xd   :  { %53 = dma.hbm_to_vmem [thread:$0]  %s49_s9, 128, %s51_s12, [#allocation6]  }
   0xe   :  { %s1401_s15 = smov [#allocation10]  }
   0xf   :  { %s77_s16 = sshll.u32 %s1401_s15, 4  ;;  %s78_s16 = int_to_ptr.vmem [resolvable:$true] %s77_s16 }
  0x10   :  { %80 = dma.hbm_to_vmem [thread:$0]  %s76_s0, 128, %s78_s16, [#allocation9]  }
  0x11   :  { %1387 = dma.done.wait [#allocation3], 6144  }
  0x12   :  { %1388 = vsyncadd [#allocation3], 4294961152 }
  0x13   :  { %1389 = dma.done.wait [#allocation6], 160  }
  0x14   :  { %1390 = vsyncadd [#allocation6], 4294967136 }
  0x15   :  { %1391 = dma.done.wait [#allocation9], 256  }
  0x16   :  { %1392 = vsyncadd [#allocation9], 4294967040  ;;  %v123_v0 = vld [vmem:[#allocation2 + $0x78] sm:$0xff]  ;;  %v122_v1 = vld [vmem:[#allocation2 + $0x70] sm:$0xff]  ;;  %s1404_s2 = smov [#allocation11]   ;;  %s1213_s19 = sshll.u32 %s2220_s5, 4  ;;  %s1214_s19 = int_to_ptr.hbm [resolvable:$true] %s1213_s19 }
  0x17   :  { %v121_v2 = vld [vmem:[#allocation2 + $0x68] sm:$0xff]  ;;  %v1450_v3 = vand.u32 4294901760, %v123_v0  ;;  %v1452_v4 = vand.u32 4294901760, %v122_v1  ;;  %v120_v6 = vld [vmem:[#allocation2 + $0x60] sm:$0xff]  ;;  %v119_v7 = vld [vmem:[#allocation2 + $0x58] sm:$0xff]  ;;  %s1211_s4 = sshll.u32 %s1404_s2, 4  ;;  %s1212_s4 = int_to_ptr.vmem [resolvable:$true] %s1211_s4 }
  0x18   :  { %v1454_v5 = vand.u32 4294901760, %v121_v2  ;;  %v118_v8 = vld [vmem:[#allocation2 + $0x50] sm:$0xff]  ;;  %v1456_v9 = vand.u32 4294901760, %v120_v6  ;;  %v1458_v10 = vand.u32 4294901760, %v119_v7  ;;  %v117_v12 = vld [vmem:[#allocation2 + $0x48] sm:$0xff]  ;;  %v116_v13 = vld [vmem:[#allocation2 + $0x40] sm:$0xff] }
  0x19   :  { %v1460_v11 = vand.u32 4294901760, %v118_v8  ;;  %170 = vmatpush.msra.mxu0 %v1450_v3  ;;  %v1464_v14 = vsub.f32 %v123_v0, %v1450_v3  ;;  %v1467_v15 = vsub.f32 %v122_v1, %v1452_v4  ;;  %v1469_v16 = vand.u32 4294901760, %v117_v12  ;;  %v115_v18 = vld [vmem:[#allocation2 + $0x38] sm:$0xff]  ;;  %366 = vmatpush.msra.mxu3 %v1450_v3  ;;  %v114_v25 = vld [vmem:[#allocation2 + $0x30] sm:$0xff]  ;;  %v113_v35 = vld [vmem:[#allocation2 + $0x28] sm:$0xff] }
  0x1a   :  { %v1472_v17 = vsub.f32 %v121_v2, %v1454_v5  ;;  %v1476_v19 = vsub.f32 %v120_v6, %v1456_v9  ;;  %v1479_v20 = vsub.f32 %v119_v7, %v1458_v10  ;;  %v1485_v24 = vand.u32 4294901760, %v116_v13  ;;  %v112_v40 = vld [vmem:[#allocation2 + $0x20] sm:$0xff]  ;;  %v111_v48 = vld [vmem:[#allocation2 + $0x18] sm:$0xff]  ;;  %v110_v52 = vld [vmem:[#allocation2 + $0x10] sm:$0xff] }
  0x1b   :  { %172 = vmatpush.msra.mxu0 %v1452_v4  ;;  %v212_v21 = vand.u32 4294901760, %v1464_v14  ;;  %v2236_v22 = vand.u32 4294901760, %v1467_v15  ;;  %313 = vmatpush.msra.mxu2 %v1464_v14  ;;  %v1489_v27 = vand.u32 4294901760, %v115_v18  ;;  %v1493_v29 = vsub.f32 %v118_v8, %v1460_v11  ;;  %v109_v58 = vld [vmem:[#allocation2 + $0x8] sm:$0xff]  ;;  %v157_v61 = vld [vmem:[#allocation2 + $0x178] sm:$0xff]  ;;  %v156_v2 = vld [vmem:[#allocation2 + $0x170] sm:$0xff] }
  0x1c   :  { %v2234_v23 = vand.u32 4294901760, %v1472_v17  ;;  %v2233_v26 = vand.u32 4294901760, %v1476_v19  ;;  %v2230_v28 = vand.u32 4294901760, %v1479_v20  ;;  %368 = vmatpush.msra.mxu3 %v1452_v4  ;;  %v1507_v33 = vsub.f32 %v117_v12, %v1469_v16  ;;  %v108_v8 = vld [vmem:[#allocation2] sm:$0xff] }
  0x1d   :  { %174 = vmatpush.msra.mxu0 %v1454_v5  ;;  %v213_v30 = vsub.f32 %v1464_v14, %v212_v21  ;;  %v219_v31 = vsub.f32 %v1467_v15, %v2236_v22  ;;  %v1509_v34 = vand.u32 4294901760, %v114_v25  ;;  %316 = vmatpush.msra.mxu2 %v1467_v15  ;;  %v2229_v39 = vand.u32 4294901760, %v1493_v29  ;;  %v149_v22 = vld [vmem:[#allocation2 + $0x138] sm:$0xff] }
  0x1e   :  { %v225_v32 = vsub.f32 %v1472_v17, %v2234_v23  ;;  %370 = vmatpush.msra.mxu3 %v1454_v5  ;;  %v231_v38 = vsub.f32 %v1476_v19, %v2233_v26  ;;  %v2227_v41 = vand.u32 4294901760, %v1507_v33  ;;  %v1520_v42 = vsub.f32 %v116_v13, %v1485_v24 }
  0x1f   :  { %176 = vmatpush.msra.mxu0 %v1456_v9  ;;  %v214_v36 = vand.u32 4294901760, %v213_v30  ;;  %v220_v37 = vand.u32 4294901760, %v219_v31  ;;  %319 = vmatpush.msra.mxu2 %v1472_v17  ;;  %v237_v44 = vsub.f32 %v1479_v20, %v2230_v28  ;;  %v1528_v45 = vand.u32 4294901760, %v113_v35 }
  0x20   :  { %372 = vmatpush.msra.mxu3 %v1456_v9  ;;  %v226_v43 = vand.u32 4294901760, %v225_v32  ;;  %v1531_v46 = vsub.f32 %v115_v18, %v1489_v27  ;;  %v1533_v47 = vand.u32 4294901760, %v112_v40  ;;  %v232_v49 = vand.u32 4294901760, %v231_v38  ;;  %v155_v32 = vld [vmem:[#allocation2 + $0x168] sm:$0xff] }
  0x21   :  { %178 = vmatpush.msra.mxu0 %v1458_v10  ;;  %215 = vmatpush.msra.mxu1 %v214_v36  ;;  %v243_v50 = vsub.f32 %v1493_v29, %v2229_v39  ;;  %v2225_v51 = vand.u32 4294901760, %v1520_v42  ;;  %v1543_v53 = vsub.f32 %v114_v25, %v1509_v34  ;;  %v249_v54 = vsub.f32 %v1507_v33, %v2227_v41 }
  0x22   :  { %322 = vmatpush.msra.mxu2 %v1476_v19  ;;  %374 = vmatpush.msra.mxu3 %v1458_v10  ;;  %v238_v55 = vand.u32 4294901760, %v237_v44  ;;  %v1551_v56 = vand.u32 4294901760, %v111_v48  ;;  %v2224_v57 = vand.u32 4294901760, %v1531_v46  ;;  %v1555_v59 = vsub.f32 %v113_v35, %v1528_v45  ;;  %v154_v44 = vld [vmem:[#allocation2 + $0x160] sm:$0xff] }
  0x23   :  { %180 = vmatpush.msra.mxu0 %v1460_v11  ;;  %221 = vmatpush.msra.mxu1 %v220_v37  ;;  %v1557_v60 = vand.u32 4294901760, %v110_v52  ;;  %v244_v62 = vand.u32 4294901760, %v243_v50  ;;  %v255_v63 = vsub.f32 %v1520_v42, %v2225_v51  ;;  %v2223_v0 = vand.u32 4294901760, %v1543_v53  ;;  %v168_v51 = vld [vmem:[#allocation7] sm:$0xff] }
  0x24   :  { %325 = vmatpush.msra.mxu2 %v1479_v20  ;;  %376 = vmatpush.msra.mxu3 %v1460_v11  ;;  %v1567_v1 = vsub.f32 %v112_v40, %v1533_v47  ;;  %v250_v6 = vand.u32 4294901760, %v249_v54  ;;  %v1569_v7 = vand.u32 4294901760, %v109_v58  ;;  %v261_v12 = vsub.f32 %v1531_v46, %v2224_v57  ;;  %v153_v54 = vld [vmem:[#allocation2 + $0x158] sm:$0xff] }
  0x25   :  { %182 = vmatpush.msra.mxu0 %v1469_v16  ;;  %227 = vmatpush.msra.mxu1 %v226_v43  ;;  %v2221_v13 = vand.u32 4294901760, %v1555_v59  ;;  %v1579_v18 = vsub.f32 %v111_v48, %v1551_v56  ;;  %v1581_v25 = vand.u32 4294901760, %v157_v61  ;;  %v1585_v30 = vsub.f32 %v110_v52, %v1557_v60 }
  0x26   :  { %328 = vmatpush.msra.mxu2 %v1493_v29  ;;  %378 = vmatpush.msra.mxu3 %v1469_v16  ;;  %v1588_v31 = vand.u32 4294901760, %v156_v2  ;;  %v256_v35 = vand.u32 4294901760, %v255_v63  ;;  %v267_v36 = vsub.f32 %v1543_v53, %v2223_v0  ;;  %v1594_v37 = vand.u32 4294901760, %v108_v8 }
  0x27   :  { %184 = vmatpush.msra.mxu0 %v1485_v24  ;;  %233 = vmatpush.msra.mxu1 %v232_v49  ;;  %v2222_v38 = vand.u32 4294901760, %v1567_v1  ;;  %v1599_v40 = vsub.f32 %v109_v58, %v1569_v7  ;;  %v1603_v43 = vsub.f32 %v157_v61, %v1581_v25  ;;  %v262_v48 = vand.u32 4294901760, %v261_v12  ;;  %v152_v12 = vld [vmem:[#allocation2 + $0x150] sm:$0xff] }
  0x28   :  { %331 = vmatpush.msra.mxu2 %v1507_v33  ;;  %380 = vmatpush.msra.mxu3 %v1485_v24  ;;  %2240 = vst [vmem:[#allocation16_spill] sm:$0xff] %v1594_v37  ;;  %v273_v49 = vsub.f32 %v1555_v59, %v2221_v13  ;;  %v2226_v50 = vand.u32 4294901760, %v1579_v18  ;;  %v1610_v52 = vand.u32 4294901760, %v155_v32  ;;  %v1616_v58 = vsub.f32 %v156_v2, %v1588_v31 }
  0x29   :  { %186 = vmatpush.msra.mxu0 %v1489_v27  ;;  %239 = vmatpush.msra.mxu1 %v238_v55  ;;  %v2228_v55 = vand.u32 4294901760, %v1585_v30  ;;  %v268_v61 = vand.u32 4294901760, %v267_v36  ;;  %v1623_v63 = vsub.f32 %v108_v8, %v1594_v37  ;;  %v2231_v2 = vand.u32 4294901760, %v1603_v43 }
  0x2a   :  { %334 = vmatpush.msra.mxu2 %v1520_v42  ;;  %382 = vmatpush.msra.mxu3 %v1489_v27  ;;  %v1630_v13 = vand.u32 4294901760, %v153_v54  ;;  %v285_v8 = vsub.f32 %v1579_v18, %v2226_v50  ;;  %v2232_v36 = vand.u32 4294901760, %v1599_v40  ;;  %v2235_v0 = vand.u32 4294901760, %v1616_v58 }
  0x2b   :  { %188 = vmatpush.msra.mxu0 %v1509_v34  ;;  %245 = vmatpush.msra.mxu1 %v244_v62  ;;  %v279_v62 = vsub.f32 %v1567_v1, %v2222_v38  ;;  %v1638_v38 = vsub.f32 %v155_v32, %v1610_v52  ;;  %v1643_v57 = vand.u32 4294901760, %v152_v12  ;;  %v2237_v32 = vand.u32 4294901760, %v1623_v63 }
  0x2c   :  { %337 = vmatpush.msra.mxu2 %v1531_v46  ;;  %384 = vmatpush.msra.mxu3 %v1509_v34  ;;  %v565_v41 = vsub.f32 %v1603_v43, %v2231_v2  ;;  %v1666_v28 = vand.u32 4294901760, %v168_v51  ;;  %v2241_v14 = vand.u32 4294901760, %v1467_v15  ;;  %v2243_v15 = vand.u32 4294901760, %v1472_v17 }
  0x2d   :  { %190 = vmatpush.msra.mxu0 %v1528_v45  ;;  %251 = vmatpush.msra.mxu1 %v250_v6  ;;  %v1625_v6 = vand.u32 4294901760, %v154_v44  ;;  %v2238_v39 = vand.u32 4294901760, %v1638_v38  ;;  %v1674_v2 = vsub.f32 %v152_v12, %v1643_v57  ;;  %v2245_v17 = vand.u32 4294901760, %v1476_v19 }
  0x2e   :  { %340 = vmatpush.msra.mxu2 %v1543_v53  ;;  %386 = vmatpush.msra.mxu3 %v1528_v45  ;;  %v566_v12 = vand.u32 4294901760, %v565_v41  ;;  %v2247_v19 = vand.u32 4294901760, %v1479_v20  ;;  %v2249_v20 = vand.u32 4294901760, %v1493_v29 }
  0x2f   :  { %192 = vmatpush.msra.mxu0 %v1533_v47  ;;  %257 = vmatpush.msra.mxu1 %v256_v35  ;;  %v274_v35 = vand.u32 4294901760, %v273_v49  ;;  %v291_v49 = vsub.f32 %v1585_v30, %v2228_v55  ;;  %v1651_v50 = vsub.f32 %v154_v44, %v1625_v6  ;;  %v286_v55 = vand.u32 4294901760, %v285_v8 }
  0x30   :  { %343 = vmatpush.msra.mxu2 %v1555_v59  ;;  %388 = vmatpush.msra.mxu3 %v1533_v47  ;;  %v297_v44 = vsub.f32 %v1599_v40, %v2232_v36  ;;  %v303_v36 = vsub.f32 %v1623_v63, %v2237_v32  ;;  %v1692_v32 = vsub.f32 %v168_v51, %v1666_v28 }
  0x31   :  { %194 = vmatpush.msra.mxu0 %v1551_v56  ;;  %263 = vmatpush.msra.mxu1 %v262_v48  ;;  %v280_v48 = vand.u32 4294901760, %v279_v62  ;;  %v151_v62 = vld [vmem:[#allocation2 + $0x148] sm:$0xff]  ;;  %v292_v8 = vand.u32 4294901760, %v291_v49  ;;  %v577_v49 = vsub.f32 %v1638_v38, %v2238_v39  ;;  %v2242_v39 = vand.u32 4294901760, %v1651_v50 }
  0x32   :  { %346 = vmatpush.msra.mxu2 %v1567_v1  ;;  %390 = vmatpush.msra.mxu3 %v1551_v56  ;;  %v1681_v23 = vand.u32 4294901760, %v151_v62 }
  0x33   :  { %196 = vmatpush.msra.mxu0 %v1557_v60  ;;  %269 = vmatpush.msra.mxu1 %v268_v61  ;;  %v1659_v61 = vsub.f32 %v153_v54, %v1630_v13  ;;  %v571_v54 = vsub.f32 %v1616_v58, %v2235_v0  ;;  %v583_v51 = vsub.f32 %v1651_v50, %v2242_v39 }
  0x34   :  { %349 = vmatpush.msra.mxu2 %v1579_v18  ;;  %392 = vmatpush.msra.mxu3 %v1557_v60  ;;  %v1705_v0 = vsub.f32 %v151_v62, %v1681_v23 }
  0x35   :  { %198 = vmatpush.msra.mxu0 %v1569_v7  ;;  %275 = vmatpush.msra.mxu1 %v274_v35  ;;  %v150_v35 = vld [vmem:[#allocation2 + $0x140] sm:$0xff] }
  0x36   :  { %352 = vmatpush.msra.mxu2 %v1585_v30  ;;  %394 = vmatpush.msra.mxu3 %v1569_v7  ;;  %v1694_v26 = vand.u32 4294901760, %v150_v35 }
  0x37   :  { %200 = vmatpush.msra.mxu0 %v1594_v37  ;;  %281 = vmatpush.msra.mxu1 %v280_v48  ;;  %v298_v48 = vand.u32 4294901760, %v297_v44  ;;  %v304_v44 = vand.u32 4294901760, %v303_v36  ;;  %v147_v36 = vld [vmem:[#allocation2 + $0x128] sm:$0xff] }
  0x38   :  { %355 = vmatpush.msra.mxu2 %v1599_v40  ;;  %396 = vmatpush.msra.mxu3 %v1594_v37  ;;  %v1707_v37 = vand.u32 4294901760, %v149_v22  ;;  %v1717_v62 = vsub.f32 %v150_v35, %v1694_v26  ;;  %v1731_v39 = vand.u32 4294901760, %v147_v36 }
  0x39   :  { %407 = vmatpush.msrb.mxu0 %v212_v21  ;;  %287 = vmatpush.msra.mxu1 %v286_v55  ;;  %v572_v21 = vand.u32 4294901760, %v571_v54  ;;  %v148_v55 = vld [vmem:[#allocation2 + $0x130] sm:$0xff]  ;;  %v2244_v54 = vand.u32 4294901760, %v1659_v61 }
  0x3a   :  { %358 = vmatpush.msra.mxu2 %v1623_v63  ;;  %567 = vmatpush.msrb.mxu3 %v566_v12  ;;  %v1719_v41 = vand.u32 4294901760, %v148_v55  ;;  %v2246_v12 = vand.u32 4294901760, %v1674_v2  ;;  %v1729_v35 = vsub.f32 %v149_v22, %v1707_v37 }
  0x3b   :  { %411 = vmatpush.msrb.mxu0 %v2241_v14  ;;  %293 = vmatpush.msra.mxu1 %v292_v8  ;;  %v589_v8 = vsub.f32 %v1659_v61, %v2244_v54  ;;  %v578_v14 = vand.u32 4294901760, %v577_v49  ;;  %v146_v54 = vld [vmem:[#allocation2 + $0x120] sm:$0xff]  ;;  %v145_v49 = vld [vmem:[#allocation2 + $0x118] sm:$0xff] }
  0x3c   :  { %522 = vmatpush.msrb.mxu2 %v1581_v25  ;;  %573 = vmatpush.msrb.mxu3 %v572_v21  ;;  %v1742_v22 = vsub.f32 %v148_v55, %v1719_v41  ;;  %v1755_v55 = vsub.f32 %v147_v36, %v1731_v39 }
  0x3d   :  { %415 = vmatpush.msrb.mxu0 %v2243_v15  ;;  %299 = vmatpush.msra.mxu1 %v298_v48  ;;  %v595_v15 = vsub.f32 %v1674_v2, %v2246_v12  ;;  %v584_v48 = vand.u32 4294901760, %v583_v51  ;;  %v590_v21 = vand.u32 4294901760, %v589_v8  ;;  %v1744_v12 = vand.u32 4294901760, %v146_v54 }
  0x3e   :  { %524 = vmatpush.msrb.mxu2 %v1588_v31  ;;  %579 = vmatpush.msrb.mxu3 %v578_v14  ;;  %v2250_v8 = vand.u32 4294901760, %v1705_v0 }
  0x3f   :  { %419 = vmatpush.msrb.mxu0 %v2245_v17  ;;  %305 = vmatpush.msra.mxu1 %v304_v44  ;;  %v2248_v44 = vand.u32 4294901760, %v1692_v32  ;;  %v2251_v17 = vand.u32 4294901760, %v1507_v33  ;;  %v1768_v36 = vsub.f32 %v146_v54, %v1744_v12  ;;  %v2253_v33 = vand.u32 4294901760, %v1520_v42 }
  0x40   :  { %526 = vmatpush.msrb.mxu2 %v1610_v52  ;;  %585 = vmatpush.msrb.mxu3 %v584_v48  ;;  %v601_v14 = vsub.f32 %v1705_v0, %v2250_v8  ;;  %v143_v8 = vld [vmem:[#allocation2 + $0x108] sm:$0xff]  ;;  %v2254_v54 = vand.u32 4294901760, %v1531_v46  ;;  %v2255_v46 = vand.u32 4294901760, %v1543_v53 }
  0x41   :  { %423 = vmatpush.msrb.mxu0 %v2247_v19  ;;  %474 = vmatpush.msrb.mxu1 %v1450_v3  ;;  %v204_v51 = vsub.f32 %v1692_v32, %v2248_v44  ;;  %v596_v3 = vand.u32 4294901760, %v595_v15  ;;  %v612_v19 = vand.u32 4294901760, %v1729_v35  ;;  %v144_v44 = vld [vmem:[#allocation2 + $0x110] sm:$0xff]  ;;  %v2252_v15 = vand.u32 4294901760, %v1717_v62 }
  0x42   :  { %528 = vmatpush.msrb.mxu2 %v1625_v6  ;;  %591 = vmatpush.msrb.mxu3 %v590_v21  ;;  %v602_v21 = vand.u32 4294901760, %v601_v14 }
  0x43   :  { %427 = vmatpush.msrb.mxu0 %v2249_v20  ;;  %476 = vmatpush.msrb.mxu1 %v1452_v4  ;;  %v1760_v4 = vand.u32 4294901760, %v145_v49  ;;  %v205_v29 = vand.u32 4294901760, %v204_v51  ;;  %v607_v48 = vsub.f32 %v1717_v62, %v2252_v15  ;;  %v618_v20 = vand.u32 4294901760, %v1742_v22 }
  0x44   :  { %530 = vmatpush.msrb.mxu2 %v1630_v13  ;;  %597 = vmatpush.msrb.mxu3 %v596_v3  ;;  %v613_v51 = vsub.f32 %v1729_v35, %v612_v19  ;;  %v630_v15 = vand.u32 4294901760, %v1768_v36 }
  0x45   :  { %431 = vmatpush.msrb.mxu0 %v2251_v17  ;;  %478 = vmatpush.msrb.mxu1 %v1454_v5  ;;  %v1773_v5 = vand.u32 4294901760, %v144_v44  ;;  %v624_v17 = vand.u32 4294901760, %v1755_v55  ;;  %v1784_v42 = vsub.f32 %v145_v49, %v1760_v4  ;;  %v608_v3 = vand.u32 4294901760, %v607_v48 }
  0x46   :  { %532 = vmatpush.msrb.mxu2 %v1643_v57  ;;  %206 = vmatmul.f32.vlgmr.msra.gmra.mxu0 %v205_v29  ;;  %v619_v14 = vsub.f32 %v1742_v22, %v618_v20  ;;  %v614_v49 = vand.u32 4294901760, %v613_v51  ;;  %v2256_v48 = vand.u32 4294901760, %v1555_v59  ;;  %v2257_v59 = vand.u32 4294901760, %v1567_v1 }
  0x47   :  { %435 = vmatpush.msrb.mxu0 %v2253_v33  ;;  %480 = vmatpush.msrb.mxu1 %v1456_v9  ;;  %v1786_v9 = vand.u32 4294901760, %v143_v8  ;;  %v142_v33 = vld [vmem:[#allocation2 + $0x100] sm:$0xff]  ;;  %v625_v29 = vsub.f32 %v1755_v55, %v624_v17  ;;  %v636_v53 = vand.u32 4294901760, %v1784_v42  ;;  %v2258_v51 = vand.u32 4294901760, %v1579_v18 }
  0x48   :  { %534 = vmatpush.msrb.mxu2 %v1681_v23  ;;  %603 = vmatpush.msrb.mxu3 %v602_v21  ;;  %v631_v21 = vsub.f32 %v1768_v36, %v630_v15  ;;  %v2260_v18 = vand.u32 4294901760, %v1599_v40 }
  0x49   :  { %439 = vmatpush.msrb.mxu0 %v2254_v54  ;;  %482 = vmatpush.msrb.mxu1 %v1458_v10  ;;  %v1797_v10 = vsub.f32 %v144_v44, %v1773_v5  ;;  %v1807_v54 = vand.u32 4294901760, %v142_v33  ;;  %v620_v44 = vand.u32 4294901760, %v619_v14 }
  0x4a   :  { %536 = vmatpush.msrb.mxu2 %v1694_v26  ;;  %609 = vmatpush.msrb.mxu3 %v608_v3  ;;  %v637_v3 = vsub.f32 %v1784_v42, %v636_v53 }
  0x4b   :  { %443 = vmatpush.msrb.mxu0 %v2255_v46  ;;  %484 = vmatpush.msrb.mxu1 %v1460_v11  ;;  %v1810_v11 = vsub.f32 %v143_v8, %v1786_v9  ;;  %v626_v8 = vand.u32 4294901760, %v625_v29  ;;  %v1829_v14 = vsub.f32 %v142_v33, %v1807_v54  ;;  %v2259_v46 = vand.u32 4294901760, %v1585_v30 }
  0x4c   :  { %538 = vmatpush.msrb.mxu2 %v1707_v37  ;;  %615 = vmatpush.msrb.mxu3 %v614_v49  ;;  %v638_v33 = vand.u32 4294901760, %v637_v3 }
  0x4d   :  { %447 = vmatpush.msrb.mxu0 %v2256_v48  ;;  %486 = vmatpush.msrb.mxu1 %v1469_v16  ;;  %v642_v16 = vand.u32 4294901760, %v1797_v10  ;;  %v648_v1 = vand.u32 4294901760, %v1810_v11  ;;  %v654_v49 = vand.u32 4294901760, %v1829_v14  ;;  %v2266_v48 = vand.u32 4294901760, %v1638_v38 }
  0x4e   :  { %540 = vmatpush.msrb.mxu2 %v1719_v41  ;;  %621 = vmatpush.msrb.mxu3 %v620_v44  ;;  %v2271_v44 = vand.u32 4294901760, %v1717_v62 }
  0x4f   :  { %451 = vmatpush.msrb.mxu0 %v2257_v59  ;;  %488 = vmatpush.msrb.mxu1 %v1485_v24  ;;  %v632_v24 = vand.u32 4294901760, %v631_v21  ;;  %v649_v30 = vsub.f32 %v1810_v11, %v648_v1  ;;  %v655_v40 = vsub.f32 %v1829_v14, %v654_v49 }
  0x50   :  { %542 = vmatpush.msrb.mxu2 %v1731_v39  ;;  %307 = vmatmul.f32.vlgmr.msra.gmra.mxu1 %v1666_v28 }
  0x51   :  { %455 = vmatpush.msrb.mxu0 %v2258_v51  ;;  %490 = vmatpush.msrb.mxu1 %v1489_v27  ;;  %v643_v27 = vsub.f32 %v1797_v10, %v642_v16 }
  0x52   :  { %544 = vmatpush.msrb.mxu2 %v1744_v12  ;;  %627 = vmatpush.msrb.mxu3 %v626_v8 }
  0x53   :  { %459 = vmatpush.msrb.mxu0 %v2259_v46  ;;  %492 = vmatpush.msrb.mxu1 %v1509_v34  ;;  %v2261_v34 = vand.u32 4294901760, %v1623_v63  ;;  %v644_v29 = vand.u32 4294901760, %v643_v27  ;;  %v2263_v63 = vand.u32 4294901760, %v1603_v43 }
  0x54   :  { %546 = vmatpush.msrb.mxu2 %v1760_v4  ;;  %633 = vmatpush.msrb.mxu3 %v632_v24 }
  0x55   :  { %463 = vmatpush.msrb.mxu0 %v2260_v18  ;;  %494 = vmatpush.msrb.mxu1 %v1528_v45  ;;  %v650_v45 = vand.u32 4294901760, %v649_v30  ;;  %v132_v18 = vld [vmem:[#allocation2 + $0xb8] sm:$0xff] }
  0x56   :  { %548 = vmatpush.msrb.mxu2 %v1773_v5  ;;  %639 = vmatpush.msrb.mxu3 %v638_v33 }
  0x57   :  { %467 = vmatpush.msrb.mxu0 %v2261_v34  ;;  %496 = vmatpush.msrb.mxu1 %v1533_v47  ;;  %v656_v47 = vand.u32 4294901760, %v655_v40 }
  0x58   :  { %550 = vmatpush.msrb.mxu2 %v1786_v9  ;;  %645 = vmatpush.msrb.mxu3 %v644_v29 }
  0x59   :  { %665 = vmatpush.msra.mxu0 %v1603_v43  ;;  %498 = vmatpush.msrb.mxu1 %v1551_v56  ;;  %v2262_v56 = vld [vmem:[#allocation16_spill] sm:$0xff]  ;;  %v2267_v43 = vand.u32 4294901760, %v1651_v50 }
  0x5a   :  { %552 = vmatpush.msrb.mxu2 %v1807_v54  ;;  %651 = vmatpush.msrb.mxu3 %v650_v45  ;;  %v1991_v45 = vand.u32 4294901760, %v132_v18 }
  0x5b   :  { %668 = vmatpush.msra.mxu0 %v1616_v58  ;;  %500 = vmatpush.msrb.mxu1 %v1557_v60  ;;  %v2264_v60 = vand.u32 4294901760, %v1616_v58  ;;  %v2268_v58 = vand.u32 4294901760, %v1659_v61 }
  0x5c   :  { %361 = vmatmul.f32.vlgmr.msra.gmra.mxu2 %v1692_v32  ;;  %657 = vmatpush.msrb.mxu3 %v656_v47  ;;  %v130_v47 = vld [vmem:[#allocation2 + $0xa8] sm:$0xff] }
  0x5d   :  { %671 = vmatpush.msra.mxu0 %v1638_v38  ;;  %502 = vmatpush.msrb.mxu1 %v1569_v7  ;;  %v2265_v7 = vand.u32 4294901760, %v1692_v32  ;;  %v140_v38 = vld [vmem:[#allocation2 + $0xf8] sm:$0xff] }
  0x5e   :  { %759 = vmatpush.msra.mxu2 %v2263_v63  ;;  %v1897_v32 = vand.u32 4294901760, %v140_v38  ;;  %469 = vmatmul.f32.vlgmr.msrb.gmra.mxu0 %v1666_v28 }
  0x5f   :  { %674 = vmatpush.msra.mxu0 %v1651_v50  ;;  %504 = vmatpush.msrb.mxu1 %v2262_v56  ;;  %v139_v50 = vld [vmem:[#allocation2 + $0xf0] sm:$0xff] }
  0x60   :  { %763 = vmatpush.msra.mxu2 %v2264_v60  ;;  %400 = vmatmul.f32.vlgmr.msra.gmra.mxu3 %v2265_v7  ;;  %v129_v7 = vld [vmem:[#allocation2 + $0xa0] sm:$0xff] }
  0x61   :  { %677 = vmatpush.msra.mxu0 %v1659_v61  ;;  %718 = vmatpush.msra.mxu1 %v1581_v25  ;;  %v520_v61 = vld [vmem:[#allocation10] sm:$0xff] }
  0x62   :  { %767 = vmatpush.msra.mxu2 %v2266_v48  ;;  %826 = vmatpush.msra.mxu3 %v1581_v25  ;;  %v2269_v25 = vand.u32 4294901760, %v1674_v2  ;;  %v1917_v59 = vand.u32 4294901760, %v520_v61  ;;  %v2018_v48 = vand.u32 4294901760, %v130_v47 }
  0x63   :  { %680 = vmatpush.msra.mxu0 %v1674_v2  ;;  %720 = vmatpush.msra.mxu1 %v1588_v31  ;;  %v1903_v2 = vand.u32 4294901760, %v139_v50 }
  0x64   :  { %771 = vmatpush.msra.mxu2 %v2267_v43  ;;  %828 = vmatpush.msra.mxu3 %v1588_v31  ;;  %v2270_v31 = vand.u32 4294901760, %v1705_v0  ;;  %v1941_v3 = vsub.f32 %v520_v61, %v1917_v59  ;;  %v2021_v43 = vsub.f32 %v132_v18, %v1991_v45 }
  0x65   :  { %683 = vmatpush.msra.mxu0 %v1705_v0  ;;  %722 = vmatpush.msra.mxu1 %v1610_v52  ;;  %v137_v0 = vld [vmem:[#allocation2 + $0xe0] sm:$0xff]  ;;  %v1925_v8 = vsub.f32 %v139_v50, %v1903_v2 }
  0x66   :  { %775 = vmatpush.msra.mxu2 %v2268_v58  ;;  %830 = vmatpush.msra.mxu3 %v1610_v52  ;;  %v138_v52 = vld [vmem:[#allocation2 + $0xe8] sm:$0xff]  ;;  %v555_v33 = vand.u32 4294901760, %v1941_v3 }
  0x67   :  { %686 = vmatpush.msra.mxu0 %v1717_v62  ;;  %724 = vmatpush.msra.mxu1 %v1625_v6  ;;  %v1913_v21 = vand.u32 4294901760, %v138_v52  ;;  %v135_v62 = vld [vmem:[#allocation2 + $0xd0] sm:$0xff] }
  0x68   :  { %779 = vmatpush.msra.mxu2 %v2269_v25  ;;  %832 = vmatpush.msra.mxu3 %v1625_v6  ;;  %v1909_v6 = vsub.f32 %v140_v38, %v1897_v32  ;;  %v128_v38 = vld [vmem:[#allocation2 + $0x98] sm:$0xff] }
  0x69   :  { %689 = vmatpush.msra.mxu0 %v1729_v35  ;;  %726 = vmatpush.msra.mxu1 %v1630_v13  ;;  %v134_v35 = vld [vmem:[#allocation2 + $0xc8] sm:$0xff]  ;;  %v2043_v61 = vand.u32 4294901760, %v128_v38 }
  0x6a   :  { %783 = vmatpush.msra.mxu2 %v2270_v31  ;;  %834 = vmatpush.msra.mxu3 %v1630_v13  ;;  %v136_v13 = vld [vmem:[#allocation2 + $0xd8] sm:$0xff]  ;;  %v1954_v46 = vand.u32 4294901760, %v134_v35  ;;  %v2031_v31 = vand.u32 4294901760, %v129_v7 }
  0x6b   :  { %692 = vmatpush.msra.mxu0 %v1742_v22  ;;  %728 = vmatpush.msra.mxu1 %v1643_v57  ;;  %v1932_v51 = vand.u32 4294901760, %v136_v13  ;;  %v913_v22 = vand.u32 4294901760, %v1925_v8 }
  0x6c   :  { %836 = vmatpush.msra.mxu3 %v1643_v57  ;;  %787 = vmatpush.msra.mxu2 %v2271_v44  ;;  %v1922_v57 = vand.u32 4294901760, %v137_v0  ;;  %v2047_v44 = vsub.f32 %v130_v47, %v2018_v48 }
  0x6d   :  { %695 = vmatpush.msra.mxu0 %v1755_v55  ;;  %730 = vmatpush.msra.mxu1 %v1681_v23 }
  0x6e   :  { %838 = vmatpush.msra.mxu3 %v1681_v23  ;;  %791 = vmatpush.msra.mxu2 %v612_v19  ;;  %v907_v23 = vand.u32 4294901760, %v1909_v6  ;;  %v1936_v19 = vsub.f32 %v138_v52, %v1913_v21  ;;  %v1950_v24 = vsub.f32 %v137_v0, %v1922_v57  ;;  %v955_v0 = vand.u32 4294901760, %v2021_v43 }
  0x6f   :  { %698 = vmatpush.msra.mxu0 %v1768_v36  ;;  %732 = vmatpush.msra.mxu1 %v1694_v26  ;;  %v131_v36 = vld [vmem:[#allocation2 + $0xb0] sm:$0xff] }
  0x70   :  { %840 = vmatpush.msra.mxu3 %v1694_v26  ;;  %795 = vmatpush.msra.mxu2 %v618_v20  ;;  %v1946_v26 = vand.u32 4294901760, %v135_v62  ;;  %v133_v20 = vld [vmem:[#allocation2 + $0xc0] sm:$0xff]  ;;  %v919_v55 = vand.u32 4294901760, %v1936_v19  ;;  %v925_v30 = vand.u32 4294901760, %v1950_v24  ;;  %v2008_v63 = vand.u32 4294901760, %v131_v36 }
  0x71   :  { %701 = vmatpush.msra.mxu0 %v1784_v42  ;;  %734 = vmatpush.msra.mxu1 %v1707_v37  ;;  %v1968_v27 = vand.u32 4294901760, %v133_v20 }
  0x72   :  { %842 = vmatpush.msra.mxu3 %v1707_v37  ;;  %799 = vmatpush.msra.mxu2 %v624_v17  ;;  %v908_v37 = vsub.f32 %v1909_v6, %v907_v23  ;;  %v1963_v17 = vsub.f32 %v136_v13, %v1932_v51  ;;  %v1978_v34 = vsub.f32 %v135_v62, %v1946_v26 }
  0x73   :  { %704 = vmatpush.msra.mxu0 %v1797_v10  ;;  %736 = vmatpush.msra.mxu1 %v1719_v41  ;;  %v920_v29 = vsub.f32 %v1936_v19, %v919_v55  ;;  %v2000_v42 = vsub.f32 %v133_v20, %v1968_v27  ;;  %v926_v56 = vsub.f32 %v1950_v24, %v925_v30  ;;  %v125_v20 = vld [vmem:[#allocation2 + $0x80] sm:$0xff] }
  0x74   :  { %844 = vmatpush.msra.mxu3 %v1719_v41  ;;  %803 = vmatpush.msra.mxu2 %v630_v15  ;;  %v914_v41 = vsub.f32 %v1925_v8, %v913_v22  ;;  %v1983_v15 = vsub.f32 %v134_v35, %v1954_v46  ;;  %v931_v40 = vand.u32 4294901760, %v1963_v17  ;;  %v2034_v52 = vsub.f32 %v131_v36, %v2008_v63 }
  0x75   :  { %707 = vmatpush.msra.mxu0 %v1810_v11  ;;  %738 = vmatpush.msra.mxu1 %v1731_v39  ;;  %v921_v10 = vand.u32 4294901760, %v920_v29  ;;  %v949_v58 = vand.u32 4294901760, %v2000_v42  ;;  %v927_v25 = vand.u32 4294901760, %v926_v56  ;;  %v127_v11 = vld [vmem:[#allocation2 + $0x90] sm:$0xff]  ;;  %v2058_v35 = vsub.f32 %v129_v7, %v2031_v31 }
  0x76   :  { %506 = vmatmul.f32.vlgmr.msrb.gmra.mxu1 %v1666_v28  ;;  %846 = vmatpush.msra.mxu3 %v1731_v39  ;;  %v909_v28 = vand.u32 4294901760, %v908_v37  ;;  %v556_v39 = vsub.f32 %v1941_v3, %v555_v33  ;;  %v943_v60 = vand.u32 4294901760, %v1983_v15  ;;  %v2054_v13 = vand.u32 4294901760, %v127_v11 }
  0x77   :  { %710 = vmatpush.msra.mxu0 %v1829_v14  ;;  %740 = vmatpush.msra.mxu1 %v1744_v12  ;;  %v126_v14 = vld [vmem:[#allocation2 + $0x88] sm:$0xff]  ;;  %v961_v62 = vand.u32 4294901760, %v2034_v52  ;;  %v956_v37 = vsub.f32 %v2021_v43, %v955_v0  ;;  %v2070_v36 = vsub.f32 %v128_v38, %v2043_v61  ;;  %v973_v47 = vand.u32 4294901760, %v2058_v35 }
  0x78   :  { %807 = vmatpush.msra.mxu2 %v636_v53  ;;  %848 = vmatpush.msra.mxu3 %v1744_v12  ;;  %v915_v53 = vand.u32 4294901760, %v914_v41  ;;  %v937_v12 = vand.u32 4294901760, %v1978_v34  ;;  %v2066_v18 = vand.u32 4294901760, %v126_v14  ;;  %v967_v41 = vand.u32 4294901760, %v2047_v44 }
  0x79   :  { %865 = vmatpush.msrb.mxu0 %v1897_v32  ;;  %742 = vmatpush.msra.mxu1 %v1760_v4  ;;  %v962_v29 = vsub.f32 %v2034_v52, %v961_v62  ;;  %v957_v56 = vand.u32 4294901760, %v956_v37  ;;  %v974_v38 = vsub.f32 %v2058_v35, %v973_v47 }
  0x7a   :  { %811 = vmatpush.msra.mxu2 %v642_v16  ;;  %850 = vmatpush.msra.mxu3 %v1760_v4  ;;  %v932_v16 = vsub.f32 %v1963_v17, %v931_v40  ;;  %v557_v4 = vand.u32 4294901760, %v556_v39  ;;  %v938_v50 = vsub.f32 %v1978_v34, %v937_v12  ;;  %v2078_v39 = vand.u32 4294901760, %v125_v20 }
  0x7b   :  { %867 = vmatpush.msrb.mxu0 %v1903_v2  ;;  %744 = vmatpush.msra.mxu1 %v1773_v5  ;;  %v968_v7 = vsub.f32 %v2047_v44, %v967_v41 }
  0x7c   :  { %815 = vmatpush.msra.mxu2 %v648_v1  ;;  %852 = vmatpush.msra.mxu3 %v1773_v5  ;;  %v944_v5 = vsub.f32 %v1983_v15, %v943_v60  ;;  %v933_v1 = vand.u32 4294901760, %v932_v16  ;;  %v2092_v16 = vsub.f32 %v126_v14, %v2066_v18 }
  0x7d   :  { %869 = vmatpush.msrb.mxu0 %v1913_v21  ;;  %746 = vmatpush.msra.mxu1 %v1786_v9 }
  0x7e   :  { %819 = vmatpush.msra.mxu2 %v654_v49  ;;  %854 = vmatpush.msra.mxu3 %v1786_v9  ;;  %v950_v9 = vsub.f32 %v2000_v42, %v949_v58  ;;  %v939_v49 = vand.u32 4294901760, %v938_v50  ;;  %v2102_v50 = vsub.f32 %v125_v20, %v2078_v39 }
  0x7f   :  { %871 = vmatpush.msrb.mxu0 %v1922_v57  ;;  %748 = vmatpush.msra.mxu1 %v1807_v54 }
  0x80   :  { %558 = vmatmul.f32.vlgmr.msrb.gmra.mxu2 %v557_v4  ;;  %856 = vmatpush.msra.mxu3 %v1807_v54  ;;  %v945_v54 = vand.u32 4294901760, %v944_v5  ;;  %v963_v4 = vand.u32 4294901760, %v962_v29  ;;  %v969_v5 = vand.u32 4294901760, %v968_v7  ;;  %v2130_v29 = vld [vmem:[#allocation8] sm:$0xff] }
  0x81   :  { %873 = vmatpush.msrb.mxu0 %v1932_v51  ;;  %910 = vmatpush.msrb.mxu1 %v909_v28  ;;  %v951_v28 = vand.u32 4294901760, %v950_v9  ;;  %v975_v9 = vand.u32 4294901760, %v974_v38  ;;  %v2140_v7 = vand.u32 4294901760, %v2130_v29 }
  0x82   :  { %1008 = vmatpush.msrb.mxu2 %v1909_v6  ;;  %659 = vmatmul.f32.vlgmr.msrb.gmra.mxu3 %v1917_v59 }
  0x83   :  { %875 = vmatpush.msrb.mxu0 %v1946_v26  ;;  %916 = vmatpush.msrb.mxu1 %v915_v53  ;;  %v2082_v53 = vsub.f32 %v127_v11, %v2054_v13  ;;  %v897_v6 = vsub.f32 %v2130_v29, %v2140_v7 }
  0x84   :  { %1011 = vmatpush.msrb.mxu2 %v1925_v8  ;;  %1061 = vmatpush.msrb.mxu3 %v1897_v32 }
  0x85   :  { %877 = vmatpush.msrb.mxu0 %v1954_v46  ;;  %922 = vmatpush.msrb.mxu1 %v921_v10  ;;  %v979_v10 = vand.u32 4294901760, %v2070_v36  ;;  %v898_v8 = vand.u32 4294901760, %v897_v6 }
  0x86   :  { %1014 = vmatpush.msrb.mxu2 %v1936_v19  ;;  %1063 = vmatpush.msrb.mxu3 %v1903_v2 }
  0x87   :  { %879 = vmatpush.msrb.mxu0 %v1968_v27  ;;  %928 = vmatpush.msrb.mxu1 %v927_v25  ;;  %v985_v25 = vand.u32 4294901760, %v2082_v53  ;;  %v980_v11 = vsub.f32 %v2070_v36, %v979_v10 }
  0x88   :  { %1017 = vmatpush.msrb.mxu2 %v1950_v24  ;;  %1065 = vmatpush.msrb.mxu3 %v1913_v21 }
  0x89   :  { %881 = vmatpush.msrb.mxu0 %v1991_v45  ;;  %934 = vmatpush.msrb.mxu1 %v933_v1  ;;  %v991_v1 = vand.u32 4294901760, %v2092_v16  ;;  %v986_v14 = vsub.f32 %v2082_v53, %v985_v25 }
  0x8a   :  { %1020 = vmatpush.msrb.mxu2 %v1963_v17  ;;  %1067 = vmatpush.msrb.mxu3 %v1922_v57 }
  0x8b   :  { %883 = vmatpush.msrb.mxu0 %v2008_v63  ;;  %940 = vmatpush.msrb.mxu1 %v939_v49  ;;  %v997_v49 = vand.u32 4294901760, %v2102_v50  ;;  %v992_v20 = vsub.f32 %v2092_v16, %v991_v1  ;;  %v987_v37 = vand.u32 4294901760, %v986_v14 }
  0x8c   :  { %1023 = vmatpush.msrb.mxu2 %v1978_v34  ;;  %1069 = vmatpush.msrb.mxu3 %v1932_v51 }
  0x8d   :  { %885 = vmatpush.msrb.mxu0 %v2018_v48  ;;  %946 = vmatpush.msrb.mxu1 %v945_v54  ;;  %v981_v54 = vand.u32 4294901760, %v980_v11 }
  0x8e   :  { %1026 = vmatpush.msrb.mxu2 %v1983_v15  ;;  %1071 = vmatpush.msrb.mxu3 %v1946_v26 }
  0x8f   :  { %887 = vmatpush.msrb.mxu0 %v2031_v31  ;;  %952 = vmatpush.msrb.mxu1 %v951_v28  ;;  %v998_v28 = vsub.f32 %v2102_v50, %v997_v49 }
  0x90   :  { %713 = vmatmul.f32.vlgmr.msra.gmra.mxu0 %v1941_v3  ;;  %1029 = vmatpush.msrb.mxu2 %v2000_v42 }
  0x91   :  { %889 = vmatpush.msrb.mxu0 %v2043_v61  ;;  %958 = vmatpush.msrb.mxu1 %v957_v56  ;;  %v993_v56 = vand.u32 4294901760, %v992_v20 }
  0x92   :  { %1073 = vmatpush.msrb.mxu3 %v1954_v46  ;;  %1032 = vmatpush.msrb.mxu2 %v2021_v43 }
  0x93   :  { %891 = vmatpush.msrb.mxu0 %v2054_v13  ;;  %964 = vmatpush.msrb.mxu1 %v963_v4  ;;  %v999_v4 = vand.u32 4294901760, %v998_v28 }
  0x94   :  { %1075 = vmatpush.msrb.mxu3 %v1968_v27  ;;  %1035 = vmatpush.msrb.mxu2 %v2034_v52 }
  0x95   :  { %893 = vmatpush.msrb.mxu0 %v2066_v18  ;;  %970 = vmatpush.msrb.mxu1 %v969_v5 }
  0x96   :  { %1077 = vmatpush.msrb.mxu3 %v1991_v45  ;;  %1038 = vmatpush.msrb.mxu2 %v2047_v44 }
  0x97   :  { %895 = vmatpush.msrb.mxu0 %v2078_v39  ;;  %976 = vmatpush.msrb.mxu1 %v975_v9 }
  0x98   :  { %1079 = vmatpush.msrb.mxu3 %v2008_v63  ;;  %1041 = vmatpush.msrb.mxu2 %v2058_v35 }
  0x99   :  { %1102 = vmatpush.msra.mxu0 %v907_v23  ;;  %982 = vmatpush.msrb.mxu1 %v981_v54 }
  0x9a   :  { %752 = vmatmul.f32.vlgmr.msra.gmra.mxu1 %v555_v33  ;;  %1081 = vmatpush.msrb.mxu3 %v2018_v48  ;;  %v1242_v33 = vld [vmem:[#allocation5 + $0x1] ss:$0 sm:$0xff] }
  0x9b   :  { %1106 = vmatpush.msra.mxu0 %v913_v22  ;;  %988 = vmatpush.msrb.mxu1 %v987_v37 }
  0x9c   :  { %821 = vmatmul.f32.vlgmr.msra.gmra.mxu2 %v1917_v59  ;;  %1083 = vmatpush.msrb.mxu3 %v2031_v31 }
  0x9d   :  { %1110 = vmatpush.msra.mxu0 %v919_v55  ;;  %994 = vmatpush.msrb.mxu1 %v993_v56 }
  0x9e   :  { %1044 = vmatpush.msrb.mxu2 %v2070_v36  ;;  %858 = vmatmul.f32.vlgmr.msra.gmra.mxu3 %v1917_v59  ;;  %v1403_v59 = vmov 127  }
  0x9f   :  { %1114 = vmatpush.msra.mxu0 %v925_v30  ;;  %1000 = vmatpush.msrb.mxu1 %v999_v4 }
  0xa0   :  { %1047 = vmatpush.msrb.mxu2 %v2082_v53  ;;  %1085 = vmatpush.msrb.mxu3 %v2043_v61 }
  0xa1   :  { %1118 = vmatpush.msra.mxu0 %v931_v40  ;;  %1169 = vmatpush.msra.mxu1 %v1897_v32  ;;  %v899_v32 = vsub.f32 %v897_v6, %v898_v8 }
  0xa2   :  { %1050 = vmatpush.msrb.mxu2 %v2092_v16  ;;  %1087 = vmatpush.msrb.mxu3 %v2054_v13 }
  0xa3   :  { %1122 = vmatpush.msra.mxu0 %v937_v12  ;;  %1171 = vmatpush.msra.mxu1 %v1903_v2  ;;  %v1402_v2 = vmov 0  }
  0xa4   :  { %1239 = vset.pattern.permute.xlu0 %v1402_v2  ;;  %1053 = vmatpush.msrb.mxu2 %v2102_v50 }
  0xa5   :  { %1126 = vmatpush.msra.mxu0 %v943_v60  ;;  %1173 = vmatpush.msra.mxu1 %v1913_v21  ;;  %v900_v21 = vand.u32 4294901760, %v899_v32 }
  0xa6   :  { %1089 = vmatpush.msrb.mxu3 %v2066_v18  ;;  %163 = vperm.xlu0 %1239, %v2130_v29  }
  0xa7   :  { %1130 = vmatpush.msra.mxu0 %v949_v58  ;;  %1175 = vmatpush.msra.mxu1 %v1922_v57 }
  0xa8   :  { %1056 = vmatmul.f32.vlgmr.msrb.gmra.mxu2 %v897_v6  ;;  %1091 = vmatpush.msrb.mxu3 %v2078_v39 }
  0xa9   :  { %1134 = vmatpush.msra.mxu0 %v955_v0  ;;  %1177 = vmatpush.msra.mxu1 %v1932_v51 }
  0xaa   :  { %901 = vmatmul.f32.vlgmr.msrb.gmra.mxu0 %v900_v21  ;;  %1095 = vmatmul.f32.vlgmr.msrb.gmra.mxu3 %v898_v8 }
  0xab   :  { %1138 = vmatpush.msra.mxu0 %v961_v62  ;;  %1179 = vmatpush.msra.mxu1 %v1946_v26 }
  0xac   :  { %1002 = vmatmul.f32.vlgmr.msrb.gmra.mxu1 %v2140_v7 }
  0xad   :  { %1142 = vmatpush.msra.mxu0 %v967_v41  ;;  %1181 = vmatpush.msra.mxu1 %v1954_v46 }
  0xae   :  { %1240 = vset.pattern.permute.xlu0 %v1403_v59 }
  0xaf   :  { %1146 = vmatpush.msra.mxu0 %v973_v47  ;;  %1183 = vmatpush.msra.mxu1 %v1968_v27  ;;  %v1241_v27 = vld [vmem:[#allocation5] ss:$0 sm:$0xff] }
  0xb0   :  { %515 = vperm.xlu0 %1240, %v2130_v29  }
  0xb1   :  { %1150 = vmatpush.msra.mxu0 %v979_v10  ;;  %1185 = vmatpush.msra.mxu1 %v1991_v45 }
  0xb3   :  { %1154 = vmatpush.msra.mxu0 %v985_v25  ;;  %1187 = vmatpush.msra.mxu1 %v2008_v63 }
  0xb5   :  { %1158 = vmatpush.msra.mxu0 %v991_v1  ;;  %1189 = vmatpush.msra.mxu1 %v2018_v48 }
  0xb7   :  { %1162 = vmatpush.msra.mxu0 %v997_v49  ;;  %1191 = vmatpush.msra.mxu1 %v2031_v31 }
  0xb8   :  { %1164 = vmatmul.f32.vlgmr.msra.gmra.mxu0 %v2140_v7 }
  0xb9   :  { %1193 = vmatpush.msra.mxu1 %v2043_v61 }
  0xbb   :  { %1195 = vmatpush.msra.mxu1 %v2054_v13 }
  0xbd   :  { %1197 = vmatpush.msra.mxu1 %v2066_v18 }
  0xbf   :  { %1199 = vmatpush.msra.mxu1 %v2078_v39 }
  0xc0   :  { %1201 = vmatmul.f32.vlgmr.msra.gmra.mxu1 %v2140_v7 }
  0xc3   :  { %v207_v57 = vpop.f32.mrf.mxu0 }
  0xcd   :  { %v308_v51 = vpop.f32.mrf.mxu1 }
  0xdb   :  { %v470_v3 = vpop.f32.mrf.mxu0 }
  0xdf   :  { %v362_v23 = vpop.f32.mrf.mxu2 }
  0xe3   :  { %v401_v19 = vpop.f32.mrf.mxu3 }
  0xf3   :  { %v507_v26 = vpop.f32.mrf.mxu1 }
 0x103   :  { %v559_v22 = vpop.f32.mrf.mxu2 }
 0x105   :  { %v660_v24 = vpop.f32.mrf.mxu3 }
 0x10d   :  { %v714_v46 = vpop.f32.mrf.mxu0 }
 0x117   :  { %v753_v55 = vpop.f32.mrf.mxu1 }
 0x118   :  { %v164_v17 = vpop.permute.xlu0 %163 }
 0x119   :  { %v167_v34 = vmul.f32 %v1241_v27, %v164_v17 }
 0x11f   :  { %v822_v30 = vpop.f32.mrf.mxu2 }
 0x121   :  { %v859_v45 = vpop.f32.mrf.mxu3 }
 0x122   :  { %v516_v15 = vpop.permute.xlu0 %515 }
 0x123   :  { %v519_v40 = vmul.f32 %v1242_v33, %v516_v15 }
 0x125   :  { %v863_v42 = vadd.f32 %v519_v40, %v167_v34 }
 0x127   :  { %v902_v63 = vpop.f32.mrf.mxu0 }
 0x128   :  { %v903_v12 = vadd.f32 %v902_v63, %v863_v42 }
 0x129   :  { %v1003_v60 = vpop.f32.mrf.mxu1 }
 0x12a   :  { %v1004_v48 = vadd.f32 %v1003_v60, %v903_v12 }
 0x12b   :  { %v1057_v43 = vpop.f32.mrf.mxu2 }
 0x12c   :  { %v1058_v58 = vadd.f32 %v1057_v43, %v1004_v48 }
 0x12d   :  { %v1096_v31 = vpop.f32.mrf.mxu3 }
 0x12e   :  { %v1097_v61 = vadd.f32 %v1096_v31, %v1058_v58 }
 0x135   :  { %v1165_v52 = vpop.f32.mrf.mxu0 }
 0x136   :  { %v1166_v0 = vadd.f32 %v1165_v52, %v1097_v61 }
 0x13d   :  { %v1202_v44 = vpop.f32.mrf.mxu1 }
 0x13e   :  { %v1203_v13 = vadd.f32 %v1202_v44, %v1166_v0 }
 0x140   :  { %1205 = vst [vmem:[#allocation11] sm:$0xff] %v1203_v13 }
 0x141   :  { %1216 = dma.vmem_to_hbm [thread:$0]  %s1212_s4, 128, %s1214_s19, [#allocation4]  }
 0x142   :  { %1393 = dma.done.wait [#allocation4], 128  }
 0x143   :  { %1394 = vsyncadd [#allocation4], 4294967168 }
 0x144   :  { %1221 = vsyncpa [#allocation3], 1 }
 0x145   :  { %1222 = vsyncpa [#allocation6], 1 }
 0x146   :  { %1223 = vsyncpa [#allocation9], 1 }
 0x147   :  { %1224 = vsyncpa [#allocation4], 1 }

</bundles_post_ra>
